<compile_context>
chip_gen: v6e
topology: v6e:2x2x1
jax: 0.10.0
libtpu: 0.0.40
codegen_flags: <defaults>
</compile_context>

<pallas_src>
import math
from functools import partial

import jax
import jax.numpy as jnp
from jax.experimental import pallas as pl
from jax.experimental.pallas import tpu as pltpu


def _round_up(n, m):
    return ((n + m - 1) // m) * m


def a2c_fused_kernel(x_ref, p_ref, out_ref, *, n_inputs, pw, n_outs, offs):
    """Fused actor+critic forward: 3 block-diagonal matmuls from one packed buffer."""
    no1 = 1 + n_outs
    r_w1, r_b1, r_w2, r_b2, r_w3, r_b3 = offs

    x = x_ref[...]                                   # [B, n_in]

    # Static (zero-cost) views into the single packed parameter buffer.
    w1 = p_ref[r_w1:r_w1 + n_inputs, :]              # [n_in, PW]
    b1 = p_ref[r_b1:r_b1 + 1, :]                     # [1, PW]
    w2 = p_ref[r_w2:r_w2 + pw, :]                    # [PW, PW] (block diagonal)
    b2 = p_ref[r_b2:r_b2 + 1, :]
    w3 = p_ref[r_w3:r_w3 + pw, :]                    # [PW, PW] (value col 0, logits cols 1..n_outs)
    b3 = p_ref[r_b3:r_b3 + 1, :]

    # Three shared matmuls (critic occupies hidden cols [0, n_h), actor [n_h, 2*n_h)).
    h = jnp.maximum(jnp.dot(x, w1, preferred_element_type=jnp.float32) + b1, 0.0)
    h = jnp.maximum(jnp.dot(h, w2, preferred_element_type=jnp.float32) + b2, 0.0)
    out = jnp.dot(h, w3, preferred_element_type=jnp.float32) + b3    # [B, PW]

    # Column 0 = critic value, columns [1, 1+n_outs) = actor logits, rest = 0-padding.
    col = jax.lax.broadcasted_iota(jnp.int32, out.shape, dimension=1)
    is_logit = (col >= 1) & (col < no1)

    # Numerically stable softmax restricted to the logit lanes (no lane slicing needed).
    masked = jnp.where(is_logit, out, -jnp.inf)
    m = jnp.max(masked, axis=1, keepdims=True)
    e = jnp.exp(masked - m)                          # non-logit lanes -> exp(-inf) = 0
    denom = jnp.sum(e, axis=1, keepdims=True)
    probs = e / denom                                # exact divide keeps 1e-5 parity

    # Single lane-dense store: probs in logit lanes, raw value (and zero pad) elsewhere.
    out_ref[...] = jnp.where(is_logit, probs, out).astype(out_ref.dtype)


def pack_params(p, n_inputs, n_hidden, n_outs):
    """Fuse/pack all weights+biases into one [rows, PW] f32 buffer.

    PW = max(2*n_hidden, 1+n_outs). Each section is padded to a multiple of 8
    rows so every in-kernel row slice starts sublane-aligned. Returns
    (packed_buffer, section_row_offsets).
    """
    H = n_hidden
    NO1 = 1 + n_outs
    PW = max(2 * H, NO1)

    w1 = jnp.zeros((n_inputs, PW), jnp.float32)
    w1 = w1.at[:, :H].set(p["cw1"]).at[:, H:2 * H].set(p["aw1"])
    b1 = jnp.zeros((1, PW), jnp.float32)
    b1 = b1.at[:, :H].set(p["cb1"]).at[:, H:2 * H].set(p["ab1"])

    w2 = jnp.zeros((PW, PW), jnp.float32)
    w2 = w2.at[:H, :H].set(p["cw2"]).at[H:2 * H, H:2 * H].set(p["aw2"])
    b2 = jnp.zeros((1, PW), jnp.float32)
    b2 = b2.at[:, :H].set(p["cb2"]).at[:, H:2 * H].set(p["ab2"])

    w3 = jnp.zeros((PW, PW), jnp.float32)
    w3 = w3.at[:H, 0:1].set(p["cw3"]).at[H:2 * H, 1:NO1].set(p["aw3"])
    b3 = jnp.zeros((1, PW), jnp.float32)
    b3 = b3.at[:, 0:1].set(p["cb3"]).at[:, 1:NO1].set(p["ab3"])

    sections = [w1, b1, w2, b2, w3, b3]
    offs, rows, padded = [], 0, []
    for s in sections:
        offs.append(rows)
        r8 = _round_up(s.shape[0], 8)
        if r8 != s.shape[0]:
            s = jnp.pad(s, ((0, r8 - s.shape[0]), (0, 0)))
        padded.append(s)
        rows += r8
    packed = jnp.concatenate(padded, axis=0)          # [rows, PW]
    return packed, tuple(offs)


def a2c_forward(x, packed, offs, *, n_inputs, n_hidden, n_outs):
    """Run the fused A2CNet forward pass. Returns (probs, value)."""
    B = x.shape[0]
    NO1 = 1 + n_outs
    PW = packed.shape[1]

    kernel = partial(a2c_fused_kernel, n_inputs=n_inputs, pw=PW, n_outs=n_outs, offs=offs)
    vmem = pl.BlockSpec(memory_space=pltpu.MemorySpace.VMEM)

    flops = 2 * B * (n_inputs * PW + PW * PW + PW * PW) + 8 * B * PW
    bytes_accessed = 4 * (x.size + packed.size + B * PW)

    y = pl.pallas_call(
        kernel,
        out_shape=jax.ShapeDtypeStruct((B, PW), jnp.float32),
        in_specs=[vmem, vmem],
        out_specs=vmem,
        cost_estimate=pl.CostEstimate(
            flops=flops, transcendentals=B * PW, bytes_accessed=bytes_accessed),
    )(x, packed)

    value = y[:, 0:1]
    probs = y[:, 1:NO1]
    return probs, value


def init_params(key, n_inputs, n_hidden, n_outs):
    """PyTorch-style init U(-1/sqrt(fan_in), 1/sqrt(fan_in)); weights stored
    pre-transposed as [in_features, out_features], biases as [1, out_features]."""
    def linear(key, fan_in, fan_out):
        kw, kb = jax.random.split(key)
        bound = 1.0 / math.sqrt(fan_in)
        w = jax.random.uniform(kw, (fan_in, fan_out), jnp.float32, -bound, bound)
        b = jax.random.uniform(kb, (1, fan_out), jnp.float32, -bound, bound)
        return w, b

    keys = jax.random.split(key, 6)
    cw1, cb1 = linear(keys[0], n_inputs, n_hidden)
    cw2, cb2 = linear(keys[1], n_hidden, n_hidden)
    cw3, cb3 = linear(keys[2], n_hidden, 1)
    aw1, ab1 = linear(keys[3], n_inputs, n_hidden)
    aw2, ab2 = linear(keys[4], n_hidden, n_hidden)
    aw3, ab3 = linear(keys[5], n_hidden, n_outs)
    return dict(
        cw1=cw1, cb1=cb1, cw2=cw2, cb2=cb2, cw3=cw3, cb3=cb3,
        aw1=aw1, ab1=ab1, aw2=aw2, ab2=ab2, aw3=aw3, ab3=ab3,
    )


def a2c_reference(x, p):
    """Pure-JAX reference replicating the PyTorch forward (unfused)."""
    h = jnp.maximum(x @ p["cw1"] + p["cb1"], 0.0)
    h = jnp.maximum(h @ p["cw2"] + p["cb2"], 0.0)
    value = h @ p["cw3"] + p["cb3"]

    a = jnp.maximum(x @ p["aw1"] + p["ab1"], 0.0)
    a = jnp.maximum(a @ p["aw2"] + p["ab2"], 0.0)
    logits = a @ p["aw3"] + p["ab3"]
    probs = jax.nn.softmax(logits, axis=1)
    return probs, value


if __name__ == "__main__":
    batch, n_inputs, n_hidden, n_outs = 8, 16, 32, 4

    key = jax.random.PRNGKey(0)
    kx, kp = jax.random.split(key)
    x = jax.random.normal(kx, (batch, n_inputs), jnp.float32)
    params = init_params(kp, n_inputs, n_hidden, n_outs)
    packed, offs = pack_params(params, n_inputs, n_hidden, n_outs)

    probs, value = a2c_forward(
        x, packed, offs, n_inputs=n_inputs, n_hidden=n_hidden, n_outs=n_outs)
    jax.block_until_ready((probs, value))

    # Sanity check against the pure-JAX reference.
    probs_ref, value_ref = a2c_reference(x, params)
    assert probs.shape == (batch, n_outs)
    assert value.shape == (batch, 1)
    assert jnp.allclose(probs, probs_ref, atol=1e-5, rtol=1e-5)
    assert jnp.allclose(value, value_ref, atol=1e-5, rtol=1e-5)
    assert jnp.allclose(jnp.sum(probs, axis=1), 1.0, atol=1e-5)

    print("KERNEL_OK")
</pallas_src>

<mosaic_0001>
module attributes {stable_mosaic.version = 11 : i64} {
  func.func @a2c_fused_kernel(%arg0: memref<8x16xf32, #tpu.memory_space<vmem>>, %arg1: memref<168x64xf32, #tpu.memory_space<vmem>>, %arg2: memref<8x64xf32, #tpu.memory_space<vmem>>) attributes {dimension_semantics = [], scalar_prefetch = 0 : i64, scratch_operands = 0 : i64, tpu.core_type = #tpu.core_type<tc>} {
    %c0 = arith.constant 0 : index
    %c0_0 = arith.constant 0 : index
    %0 = vector.load %arg0[%c0, %c0_0] : memref<8x16xf32, #tpu.memory_space<vmem>>, vector<8x16xf32>
    %c0_1 = arith.constant 0 : index
    %c0_2 = arith.constant 0 : index
    %1 = vector.load %arg1[%c0_1, %c0_2] : memref<168x64xf32, #tpu.memory_space<vmem>>, vector<16x64xf32>
    %c16 = arith.constant 16 : index
    %c0_3 = arith.constant 0 : index
    %2 = vector.load %arg1[%c16, %c0_3] : memref<168x64xf32, #tpu.memory_space<vmem>>, vector<1x64xf32>
    %c24 = arith.constant 24 : index
    %c0_4 = arith.constant 0 : index
    %3 = vector.load %arg1[%c24, %c0_4] : memref<168x64xf32, #tpu.memory_space<vmem>>, vector<64x64xf32>
    %c88 = arith.constant 88 : index
    %c0_5 = arith.constant 0 : index
    %4 = vector.load %arg1[%c88, %c0_5] : memref<168x64xf32, #tpu.memory_space<vmem>>, vector<1x64xf32>
    %c96 = arith.constant 96 : index
    %c0_6 = arith.constant 0 : index
    %5 = vector.load %arg1[%c96, %c0_6] : memref<168x64xf32, #tpu.memory_space<vmem>>, vector<64x64xf32>
    %c160 = arith.constant 160 : index
    %c0_7 = arith.constant 0 : index
    %6 = vector.load %arg1[%c160, %c0_7] : memref<168x64xf32, #tpu.memory_space<vmem>>, vector<1x64xf32>
    %cst = arith.constant dense<0.000000e+00> : vector<8x64xf32>
    %7 = tpu.matmul %0, %1, %cst {dimension_numbers = #tpu.dot_dimension_numbers<[1], [0], [0], [1], [0, 0, 1, 1], [], []>} : vector<8x16xf32>, vector<16x64xf32>, vector<8x64xf32> -> vector<8x64xf32>
    %8 = vector.broadcast %2 : vector<1x64xf32> to vector<8x64xf32>
    %9 = arith.addf %7, %8 : vector<8x64xf32>
    %cst_8 = arith.constant 0.000000e+00 : f32
    %10 = vector.broadcast %cst_8 : f32 to vector<8x64xf32>
    %11 = arith.maximumf %9, %10 : vector<8x64xf32>
    %cst_9 = arith.constant dense<0.000000e+00> : vector<8x64xf32>
    %12 = tpu.matmul %11, %3, %cst_9 {dimension_numbers = #tpu.dot_dimension_numbers<[1], [0], [0], [1], [0, 0, 1, 1], [], []>} : vector<8x64xf32>, vector<64x64xf32>, vector<8x64xf32> -> vector<8x64xf32>
    %13 = vector.broadcast %4 : vector<1x64xf32> to vector<8x64xf32>
    %14 = arith.addf %12, %13 : vector<8x64xf32>
    %cst_10 = arith.constant 0.000000e+00 : f32
    %15 = vector.broadcast %cst_10 : f32 to vector<8x64xf32>
    %16 = arith.maximumf %14, %15 : vector<8x64xf32>
    %cst_11 = arith.constant dense<0.000000e+00> : vector<8x64xf32>
    %17 = tpu.matmul %16, %5, %cst_11 {dimension_numbers = #tpu.dot_dimension_numbers<[1], [0], [0], [1], [0, 0, 1, 1], [], []>} : vector<8x64xf32>, vector<64x64xf32>, vector<8x64xf32> -> vector<8x64xf32>
    %18 = vector.broadcast %6 : vector<1x64xf32> to vector<8x64xf32>
    %19 = arith.addf %17, %18 : vector<8x64xf32>
    %20 = tpu.iota {dimensions = array<i32: 1>} : vector<8x64xi32>
    %c1_i32 = arith.constant 1 : i32
    %21 = vector.broadcast %c1_i32 : i32 to vector<8x64xi32>
    %22 = arith.cmpi sge, %20, %21 : vector<8x64xi32>
    %c5_i32 = arith.constant 5 : i32
    %23 = vector.broadcast %c5_i32 : i32 to vector<8x64xi32>
    %24 = arith.cmpi slt, %20, %23 : vector<8x64xi32>
    %25 = arith.andi %22, %24 : vector<8x64xi1>
    %cst_12 = arith.constant 0xFF800000 : f32
    %26 = vector.broadcast %cst_12 : f32 to vector<8x64xf32>
    %27 = arith.select %25, %19, %26 : vector<8x64xi1>, vector<8x64xf32>
    %cst_13 = arith.constant dense<0xFF800000> : vector<8xf32>
    %28 = vector.multi_reduction <maximumf>, %27, %cst_13 [1] : vector<8x64xf32> to vector<8xf32>
    %29 = vector.shape_cast %28 : vector<8xf32> to vector<8x1xf32>
    %30 = vector.broadcast %29 : vector<8x1xf32> to vector<8x64xf32>
    %31 = arith.subf %27, %30 : vector<8x64xf32>
    %32 = math.exp %31 : vector<8x64xf32>
    %cst_14 = arith.constant dense<0.000000e+00> : vector<8xf32>
    %33 = vector.multi_reduction <add>, %32, %cst_14 [1] : vector<8x64xf32> to vector<8xf32>
    %34 = vector.shape_cast %33 : vector<8xf32> to vector<8x1xf32>
    %35 = vector.broadcast %34 : vector<8x1xf32> to vector<8x64xf32>
    %36 = arith.divf %32, %35 : vector<8x64xf32>
    %37 = arith.select %25, %36, %19 : vector<8x64xi1>, vector<8x64xf32>
    %c0_15 = arith.constant 0 : index
    %c0_16 = arith.constant 0 : index
    %38 = vector.load %arg2[%c0_15, %c0_16] : memref<8x64xf32, #tpu.memory_space<vmem>>, vector<8x64xf32>
    tpu.vector_store %arg2[%c0_15, %c0_16], %37 {strides = array<i32>} : memref<8x64xf32, #tpu.memory_space<vmem>>, vector<8x64xf32>,
    return
  }
}

</mosaic_0001>

<bundles_post_ra>
// kernel: tpu_custom_call.1
= control target key start
LH: loop header
LB: loop body
LE: loop exit
PB: predicated region body
PF: predicated region fallthrough
CT: control target
= control target key end

     0   :  { %v403_v1 = vmov 0.0   ;;  %vm404_vm0 = vmmov 0   ;;  %vm38_vm1 = vcmask 130048   ;;  %s527_s0 = inlined_call_operand.vmem [shape: f32[8,16], index: 0, kind: input, shape index: {}]   ;;  %s528_s1 = inlined_call_operand.vmem [shape: f32[168,64], index: 1, kind: input, shape index: {}]   ;;  %s529_s2 = inlined_call_operand.hbm [shape: f32[8,64], index: 2, kind: output, shape index: {}]  }
   0x1   :  { %v14_v0 = vld [vmem:[%s528_s1 + $0x8] sm:$0xff]  ;;  %329 = vmatprep.subr.mxu0 %v403_v1  ;;  %v13_v2 = vld [vmem:[%s528_s1] sm:$0xff]  ;;  %333 = vmatprep.mubr.msk.f32.mxu0 %vm404_vm0, %v403_v1  ;;  %v23_v3 = vld [vmem:[%s528_s1 + $0x50] sm:$0xff] }
   0x2   :  { %330 = vmatpush3.msra.mxu0 %v14_v0  ;;  %v12_v4 = vld [vmem:[%s527_s0] sm:$0xff]  ;;  %336 = vmatprep.subr.mxu1 %v403_v1  ;;  %v22_v5 = vld [vmem:[%s528_s1 + $0x48] sm:$0xff] }
   0x3   :  { %331 = vmatprep.subr.mxu0 %v403_v1  ;;  %337 = vmatpush3.msra.mxu1 %v23_v3 }
   0x4   :  { %7 = vsyncpa [#allocation3], 0  ;;  %332 = vmatpush3.msra.mxu0 %v13_v2  ;;  %338 = vmatprep.subr.mxu1 %v403_v1  ;;  %v21_v6 = vld [vmem:[%s528_s1 + $0x40] sm:$0xff]  ;;  %v20_v7 = vld [vmem:[%s528_s1 + $0x38] sm:$0xff]  ;;  %vm117_vm2 = vcmask 523264   ;;  %v269_v30 = vlaneseq }
   0x5   :  { %334 = vmatmul.mubr.msk.f32.vlgmr.msra.gmra.mxu0 %vm38_vm1, %v12_v4  ;;  %339 = vmatpush3.msra.mxu1 %v22_v5  ;;  %v19_v8 = vld [vmem:[%s528_s1 + $0x30] sm:$0xff]  ;;  %v18_v9 = vld [vmem:[%s528_s1 + $0x28] sm:$0xff]  ;;  %v17_v10 = vld [vmem:[%s528_s1 + $0x20] sm:$0xff] }
   0x6   :  { %340 = vmatprep.subr.mxu1 %v403_v1  ;;  %352 = vmatprep.mubr.msk.f32.mxu1 %vm404_vm0, %v403_v1  ;;  %v16_v11 = vld [vmem:[%s528_s1 + $0x18] sm:$0xff]  ;;  %v31_v13 = vld [vmem:[%s528_s1 + $0x90] sm:$0xff]  ;;  %v30_v14 = vld [vmem:[%s528_s1 + $0x88] sm:$0xff]  ;;  %v270_v31 = vand.u32 127, %v269_v30 }
   0x7   :  { %341 = vmatpush3.msra.mxu1 %v21_v6  ;;  %355 = vmatprep.subr.mxu0 %v403_v1  ;;  %v32_v12 = vld [vmem:[%s528_s1 + $0x98] sm:$0xff]  ;;  %v29_v15 = vld [vmem:[%s528_s1 + $0x80] sm:$0xff]  ;;  %v302_v17 = vld [vmem:[%s528_s1 + $0x10] ss:$0 sm:$0xff] }
   0x8   :  { %342 = vmatprep.subr.mxu1 %v403_v1  ;;  %371 = vmatprep.mubr.msk.f32.mxu0 %vm404_vm0, %v403_v1  ;;  %v28_v16 = vld [vmem:[%s528_s1 + $0x78] sm:$0xff]  ;;  %v27_v22 = vld [vmem:[%s528_s1 + $0x70] sm:$0xff]  ;;  %v26_v23 = vld [vmem:[%s528_s1 + $0x68] sm:$0xff]  ;;  %vm271_vm3 = vcmp.ge.s32.totalorder %v270_v31, 1  ;;  %vm272_vm4 = vcmp.lt.s32.totalorder %v270_v31, 5 }
   0x9   :  { %343 = vmatpush3.msra.mxu1 %v20_v7  ;;  %356 = vmatpush3.msra.mxu0 %v32_v12  ;;  %v25_v24 = vld [vmem:[%s528_s1 + $0x60] sm:$0xff]  ;;  %v304_v25 = vld [vmem:[%s528_s1 + $0x58] ss:$0 sm:$0xff]  ;;  %vm513_vm5 = vmand %vm271_vm3, %vm272_vm4 }
   0xa   :  { %344 = vmatprep.subr.mxu1 %v403_v1  ;;  %357 = vmatprep.subr.mxu0 %v403_v1  ;;  %v306_v32 = vld [vmem:[%s528_s1 + $0xa0] ss:$0 sm:$0xff]  ;;  %s405_s1 = smov [#allocation2]  }
   0xb   :  { %345 = vmatpush3.msra.mxu1 %v19_v8  ;;  %358 = vmatpush3.msra.mxu0 %v31_v13  ;;  %s294_s23 = sshll.u32 %s405_s1, 4  ;;  %s295_s23 = int_to_ptr.vmem [resolvable:$true] %s294_s23 }
   0xc   :  { %346 = vmatprep.subr.mxu1 %v403_v1  ;;  %359 = vmatprep.subr.mxu0 %v403_v1  ;;  %s381_s24 = scalar_lea.vmem %s295_s23, 128  ;;  %p386_p1 = scmp.lt.s32.totalorder %s295_s23, %s295_s23 }
   0xd   :  { %347 = vmatpush3.msra.mxu1 %v18_v9  ;;  %360 = vmatpush3.msra.mxu0 %v30_v14  ;;  %p382_p0 = scmp.ne.s32.totalorder %s295_s23, %s381_s24  ;;  %p387_p2 = scmp.lt.s32.totalorder %s381_s24, %s381_s24 }
   0xe   :  { %348 = vmatprep.subr.mxu1 %v403_v1  ;;  %361 = vmatprep.subr.mxu0 %v403_v1 }
   0xf   :  { %349 = vmatpush3.msra.mxu1 %v17_v10  ;;  %362 = vmatpush3.msra.mxu0 %v29_v15  ;;  %p388_p3 = por %p387_p2, %p386_p1 }
  0x10   :  { %350 = vmatprep.subr.mxu1 %v403_v1  ;;  %363 = vmatprep.subr.mxu0 %v403_v1 }
  0x11   :  { %351 = vmatpush3.msra.mxu1 %v16_v11  ;;  %364 = vmatpush3.msra.mxu0 %v28_v16  ;;  %p389_p4 = pnand %p388_p3, %p382_p0 }
  0x12   :  { %365 = vmatprep.subr.mxu0 %v403_v1 }
  0x13   :  { %366 = vmatpush3.msra.mxu0 %v27_v22 }
  0x14   :  { %367 = vmatprep.subr.mxu0 %v403_v1 }
  0x15   :  { %368 = vmatpush3.msra.mxu0 %v26_v23 }
  0x16   :  { %369 = vmatprep.subr.mxu0 %v403_v1 }
  0x17   :  { %370 = vmatpush3.msra.mxu0 %v25_v24 }
  0xc5   :  { %v108_v18 = vpop.f32.mrf.mxu0 }
  0xc6   :  { %v109_v19 = vadd.f32 %v302_v17, %v108_v18 }
  0xc7   :  { %v335_v20 = vpop.f32.mrf.mxu0 }
  0xc8   :  { %v112_v21 = vmax.f32 %v109_v19, 0.0 }
  0xca   :  { %353 = vmatmul.mubr.msk.f32.vlgmr.msra.gmra.mxu1 %vm117_vm2, %v112_v21 }
 0x18a   :  { %v187_v26 = vpop.f32.mrf.mxu1 }
 0x18b   :  { %v188_v27 = vadd.f32 %v304_v25, %v187_v26 }
 0x18c   :  { %v354_v28 = vpop.f32.mrf.mxu1 }
 0x18d   :  { %v191_v29 = vmax.f32 %v188_v27, 0.0 }
 0x18f   :  { %372 = vmatmul.mubr.msk.f32.vlgmr.msra.gmra.mxu0 %vm117_vm2, %v191_v29 }
 0x24f   :  { %v265_v33 = vpop.f32.mrf.mxu0 }
 0x250   :  { %v266_v35 = vadd.f32 %v306_v32, %v265_v33 }
 0x251   :  { %v373_v36 = vpop.f32.mrf.mxu0 }
 0x252   :  { %v274_v37 = vsel %vm513_vm5, %v266_v35, -inf }
 0x253   :  { %v275_v38 = vsel %vm117_vm2, %v274_v37, -inf }
 0x254   :  { %276 = vmax.xlane.f32.xlu0 %v275_v38 }
 0x2dd   :  { %v277_v39 = vpop.xlane.xlu0 %276 }
 0x2de   :  { %v278_v40 = vsub.f32 %v274_v37, %v277_v39 }
 0x2e0   :  { %v279_v41 = vmul.f32 1.442695, %v278_v40 }
 0x2e2   :  { %377 = vpow2.f32 %v279_v41 }
 0x2ef   :  { %v378_v42 = vpop.eup %377 }
 0x2f0   :  { %v281_v43 = vsel %vm117_vm2, %v378_v42, 0.0 }
 0x2f1   :  { %282 = vadd.xlane.f32.xlu0 %v281_v43 }
 0x37a   :  { %v283_v44 = vpop.xlane.xlu0 %282 }
 0x37b   :  { %379 = vrcp.f32 %v283_v44 }
 0x388   :  { %v380_v45 = vpop.eup %379 }
 0x389   :  { %v285_v46 = vmul.f32 %v380_v45, %v378_v42 }
 0x38b   :  { %v286_v47 = vsel %vm513_vm5, %v285_v46, %v266_v35 }
 0x38c   :  { %287 = vst.msk [vmem:[#allocation2] sm:$0xff] %vm117_vm2, %v286_v47 }
 0x38d   :  { %392 = shalt.err (!%p389_p4)
}
 0x38e   :  { %297 = dma.vmem_to_hbm [thread:$0]  %s295_s23, 128, %s529_s2, [#allocation3]  }
 0x38f   :  { %401 = dma.done.wait [#allocation3], 128  }
 0x390   :  { %402 = vsyncadd [#allocation3], 4294967168 }
 0x391   :  { %301 = vsyncpa [#allocation3], 1 }

</bundles_post_ra>
